<compile_context>
chip_gen: v7x
topology: tpu7x:2x2x1
jax: 0.10.0
libtpu: 0.0.40
codegen_flags: <defaults>
</compile_context>

<pallas_src>
import math

import jax
import jax.numpy as jnp
from jax import lax
from jax.experimental import pallas as pl
from jax.experimental.pallas import tpu as pltpu


OUT_ROWS = 8            # transposed output rows: [value | mean(2) | zero pad]
_LANE = 128             # lane width; batch is padded to a multiple of this
_SINGLE_TILE_MAX = 1024  # <= this padded batch -> one tile (overhead-dominated)
_TARGET_TB = 2048        # target rows per tile for large batches
_PALLAS_MIN_BATCH = 1024  # below this, plain XLA fusion beats a Pallas launch


# ------------------------- Pallas kernel (hot path) -------------------------

def _ac_fused_kernel(x_ref, w1_ref, b1_ref, w2_ref, b2_ref, w3_ref, b3_ref,
                     out_ref):
    # Fused critic+actor MLP: 3 matmuls, tanh between layers, none after last.
    h = jnp.tanh(jnp.dot(x_ref[...], w1_ref[...],
                         preferred_element_type=jnp.float32) + b1_ref[...])
    h = jnp.tanh(jnp.dot(h, w2_ref[...],
                         preferred_element_type=jnp.float32) + b2_ref[...])
    # Last layer emitted transposed: w3 (8, 64) contracted with h (TB, 64) on
    # their 64-wide dims -> (8, TB).  Batch lands on the lane axis, so the
    # writeback is a lane-dense 32 B/row slab instead of 512 B/row.
    out = lax.dot_general(w3_ref[...], h, (((1,), (1,)), ((), ())),
                          preferred_element_type=jnp.float32)
    out_ref[...] = out + b3_ref[...]          # b3 is (8, 1), lane-broadcast


# ------------------------------- helpers -------------------------------------

def _cdiv(a, b):
    return -(-a // b)


def _round_up(n, m):
    return ((n + m - 1) // m) * m


def _choose_tiling(B):
    """Pick (tile, padded_batch).  Padding is at most one lane-multiple for
    small B and a few percent for large B; large batches get an even number of
    grid steps so both v7x TensorCores are used."""
    B_pad = _round_up(max(B, 1), _LANE)
    if B_pad <= _SINGLE_TILE_MAX:
        return B_pad, B_pad
    n = max(2, _cdiv(B_pad, _TARGET_TB))
    if n % 2:
        n += 1                      # even #steps -> both v7x TCs get work
    TB = _round_up(_cdiv(B_pad, n), _LANE)
    B_pad = _round_up(B_pad, TB)
    return TB, B_pad


def pack_params(params):
    """Pack per-head Linear params into one block-diagonal fused MLP.

    Call ONCE at init (hoisted out of the forward path).  Returns
    ((w1, b1, w2, b2, w3, b3), (critic_out, actor_out)).
    """
    (cw1, cb1, cw2, cb2, cw3, cb3,
     aw1, ab1, aw2, ab2, aw3, ab3) = params
    h1c, h1a = cw1.shape[1], aw1.shape[1]
    h2c, h2a = cw2.shape[1], aw2.shape[1]
    oc, oa = cw3.shape[1], aw3.shape[1]
    assert oc + oa <= OUT_ROWS

    w1 = jnp.concatenate([cw1, aw1], axis=1)                      # (9, 64)
    b1 = jnp.concatenate([cb1, ab1], axis=1)                      # (1, 64)

    w2 = jnp.zeros((h1c + h1a, h2c + h2a), jnp.float32)           # (64, 64)
    w2 = w2.at[:h1c, :h2c].set(cw2).at[h1c:, h2c:].set(aw2)
    b2 = jnp.concatenate([cb2, ab2], axis=1)                      # (1, 64)

    # Last layer stored transposed (out, in): row 0 = critic, rows 1:3 = actor.
    w3 = jnp.zeros((OUT_ROWS, h2c + h2a), jnp.float32)            # (8, 64)
    w3 = w3.at[:oc, :h2c].set(cw3.T).at[oc:oc + oa, h2c:].set(aw3.T)
    b3 = jnp.zeros((OUT_ROWS, 1), jnp.float32)                    # (8, 1)
    b3 = b3.at[:oc, 0].set(cb3[0]).at[oc:oc + oa, 0].set(ab3[0])

    return (w1, b1, w2, b2, w3, b3), (oc, oa)


# --------------------------- fused heads (dispatch) ---------------------------

def ac_simple_heads(x, packed, critic_out, actor_out, *, force_pallas=False):
    """Run both MLP heads fused.  x: (B, 9) f32 -> (value (B,1), mean (B,2))."""
    w1, b1, w2, b2, w3, b3 = packed
    B, D = x.shape

    if B < _PALLAS_MIN_BATCH and not force_pallas:
        # Tiny-batch inference path: one plain-XLA fusion, no kernel launch.
        h = jnp.tanh(x @ w1 + b1)
        h = jnp.tanh(h @ w2 + b2)
        out = h @ w3.T + b3.T                                     # (B, 8)
        return (out[:, :critic_out],
                out[:, critic_out:critic_out + actor_out])

    TB, B_pad = _choose_tiling(B)
    if B_pad != B:
        x = jnp.pad(x, ((0, B_pad - B), (0, 0)))
    grid = (B_pad // TB,)

    h1 = w1.shape[1]
    h2 = w2.shape[1]
    weight_bytes = 4 * (w1.size + b1.size + w2.size + b2.size + w3.size + b3.size)
    cost = pl.CostEstimate(
        flops=2 * B_pad * (D * h1 + h1 * h2 + h2 * OUT_ROWS),
        transcendentals=B_pad * (h1 + h2),
        bytes_accessed=B_pad * 4 * (D + OUT_ROWS) + weight_bytes)

    out_t = pl.pallas_call(
        _ac_fused_kernel,
        out_shape=jax.ShapeDtypeStruct((OUT_ROWS, B_pad), jnp.float32),
        grid=grid,
        in_specs=[
            pl.BlockSpec((TB, D), lambda i: (i, 0)),      # x: tiled on batch
            pl.BlockSpec(w1.shape, lambda i: (0, 0)),     # weights/biases stay
            pl.BlockSpec(b1.shape, lambda i: (0, 0)),     # VMEM-resident
            pl.BlockSpec(w2.shape, lambda i: (0, 0)),
            pl.BlockSpec(b2.shape, lambda i: (0, 0)),
            pl.BlockSpec(w3.shape, lambda i: (0, 0)),
            pl.BlockSpec(b3.shape, lambda i: (0, 0)),
        ],
        # Transposed, lane-dense output: batch on the lane axis.
        out_specs=pl.BlockSpec((OUT_ROWS, TB), lambda i: (0, i)),
        compiler_params=pltpu.CompilerParams(
            dimension_semantics=("parallel",),
            vmem_limit_bytes=32 * 1024 * 1024),
        cost_estimate=cost,
    )(x, w1, b1, w2, b2, w3, b3)

    # Contiguous row slices of a tiny (8, B) slab, then trivial transposes.
    value = out_t[:critic_out, :B].T                              # (B, 1)
    dist_mean = out_t[critic_out:critic_out + actor_out, :B].T    # (B, 2)
    return value, dist_mean


# ----------------------------- Module wrapper --------------------------------

def init_params(key, input_dim=9, mlp_critic_dims=(32, 32, 1),
                mlp_actor_dims=(32, 32, 2)):
    """Deterministic PyTorch-Linear-like init (uniform +/- 1/sqrt(fan_in)).
    Weights stored pre-transposed as (in_features, out_features)."""
    def linear(k, fan_in, fan_out):
        kw, kb = jax.random.split(k)
        bound = 1.0 / math.sqrt(fan_in)
        w = jax.random.uniform(kw, (fan_in, fan_out), jnp.float32, -bound, bound)
        b = jax.random.uniform(kb, (1, fan_out), jnp.float32, -bound, bound)
        return w, b

    keys = jax.random.split(key, 6)
    c_dims = [input_dim] + list(mlp_critic_dims)
    a_dims = [input_dim] + list(mlp_actor_dims)

    cw1, cb1 = linear(keys[0], c_dims[0], c_dims[1])
    cw2, cb2 = linear(keys[1], c_dims[1], c_dims[2])
    cw3, cb3 = linear(keys[2], c_dims[2], c_dims[3])
    aw1, ab1 = linear(keys[3], a_dims[0], a_dims[1])
    aw2, ab2 = linear(keys[4], a_dims[1], a_dims[2])
    aw3, ab3 = linear(keys[5], a_dims[2], a_dims[3])
    return (cw1, cb1, cw2, cb2, cw3, cb3, aw1, ab1, aw2, ab2, aw3, ab3)


def actor_critic_simple_forward(packed_bundle, x, time,
                                init_std=0.6, annealing_rate=1e-4,
                                *, force_pallas=False):
    """Mirrors ActorCritic_simple.forward(x, time).

    `packed_bundle` is the result of pack_params(params) computed ONCE at init.
    Returns (value, (dist_mean, dist_cov)); dist_cov = dist_std * eye(2)
    broadcast over batch (exactly the covariance the torch code passes to
    MultivariateNormal -- note the reference scales by std, not std**2).
    """
    packed, (critic_out, actor_out) = packed_bundle
    value, dist_mean = ac_simple_heads(x, packed, critic_out, actor_out,
                                       force_pallas=force_pallas)

    # NOTE: `time` must be a static Python scalar (math.exp / max / `if` below),
    # matching the PyTorch code; wrap with lax.cond if it ever becomes traced.
    if time == 0:
        dist_std = init_std
    else:
        dist_std = max(init_std * math.exp(-annealing_rate * time), 0.01)

    # TODO(synk): torch.distributions.MultivariateNormal object itself has no
    # Pallas/JAX-array equivalent; we return its (mean, covariance) parameters.
    dist_cov = dist_std * jnp.broadcast_to(
        jnp.eye(actor_out, dtype=jnp.float32),
        (x.shape[0], actor_out, actor_out))
    return value, (dist_mean, dist_cov)


# --------------------------- pure-JAX reference -------------------------------

def _reference_heads(params, x):
    (cw1, cb1, cw2, cb2, cw3, cb3,
     aw1, ab1, aw2, ab2, aw3, ab3) = params
    h = jnp.tanh(x @ cw1 + cb1)
    h = jnp.tanh(h @ cw2 + cb2)
    value = h @ cw3 + cb3
    a = jnp.tanh(x @ aw1 + ab1)
    a = jnp.tanh(a @ aw2 + ab2)
    mean = a @ aw3 + ab3
    return value, mean


# ----------------------------------- main -------------------------------------

if __name__ == "__main__":
    key = jax.random.PRNGKey(0)
    k_params, k_x1, k_x2 = jax.random.split(key, 3)

    params = init_params(k_params)
    packed_bundle = pack_params(params)        # packed ONCE, reused per forward

    # batch=2, observation dim fixed at 9 by the module's __init__
    x_small = jax.random.normal(k_x1, (2, 9), dtype=jnp.float32)
    value, (dist_mean, dist_cov) = actor_critic_simple_forward(
        packed_bundle, x_small, time=0, init_std=0.6, annealing_rate=1e-4,
        force_pallas=True)                     # exercise the Pallas kernel
    jax.block_until_ready((value, dist_mean, dist_cov))

    assert value.shape == (2, 1)
    assert dist_mean.shape == (2, 2)
    assert dist_cov.shape == (2, 2, 2)

    ref_value, ref_mean = _reference_heads(params, x_small)
    assert jnp.allclose(value, ref_value, atol=1e-5, rtol=1e-5)
    assert jnp.allclose(dist_mean, ref_mean, atol=1e-5, rtol=1e-5)

    # Larger rollout batch: exercises the multi-tile padded path (grid of 2,
    # even #steps for v7x) through the same kernel.
    x_big = jax.random.normal(k_x2, (2500, 9), dtype=jnp.float32)
    value_b, (mean_b, _) = actor_critic_simple_forward(
        packed_bundle, x_big, time=1000, init_std=0.6, annealing_rate=1e-4,
        force_pallas=True)
    jax.block_until_ready((value_b, mean_b))
    ref_vb, ref_mb = _reference_heads(params, x_big)
    assert jnp.allclose(value_b, ref_vb, atol=1e-4, rtol=1e-4)
    assert jnp.allclose(mean_b, ref_mb, atol=1e-4, rtol=1e-4)

    print("KERNEL_OK")
</pallas_src>

<mosaic_0001>
module attributes {stable_mosaic.version = 11 : i64} {
  func.func @_ac_fused_kernel(%arg0: i32, %arg1: memref<128x9xf32, #tpu.memory_space<vmem>>, %arg2: memref<9x64xf32, #tpu.memory_space<vmem>>, %arg3: memref<1x64xf32, #tpu.memory_space<vmem>>, %arg4: memref<64x64xf32, #tpu.memory_space<vmem>>, %arg5: memref<1x64xf32, #tpu.memory_space<vmem>>, %arg6: memref<8x64xf32, #tpu.memory_space<vmem>>, %arg7: memref<8x1xf32, #tpu.memory_space<vmem>>, %arg8: memref<8x128xf32, #tpu.memory_space<vmem>>) attributes {dimension_semantics = [#tpu.dimension_semantics<parallel>], iteration_bounds = array<i64: 1>, scalar_prefetch = 0 : i64, scratch_operands = 0 : i64, tpu.core_type = #tpu.core_type<tc>, window_params = [{transform_indices = @transform_0, window_bounds = array<i64: 128, 9>}, {pipeline_mode = #tpu.pipeline_mode<synchronous>, transform_indices = @transform_1, window_bounds = array<i64: 9, 64>}, {pipeline_mode = #tpu.pipeline_mode<synchronous>, transform_indices = @transform_2, window_bounds = array<i64: 1, 64>}, {pipeline_mode = #tpu.pipeline_mode<synchronous>, transform_indices = @transform_3, window_bounds = array<i64: 64, 64>}, {pipeline_mode = #tpu.pipeline_mode<synchronous>, transform_indices = @transform_4, window_bounds = array<i64: 1, 64>}, {pipeline_mode = #tpu.pipeline_mode<synchronous>, transform_indices = @transform_5, window_bounds = array<i64: 8, 64>}, {pipeline_mode = #tpu.pipeline_mode<synchronous>, transform_indices = @transform_6, window_bounds = array<i64: 8, 1>}, {transform_indices = @transform_7, window_bounds = array<i64: 8, 128>}]} {
    %c0 = arith.constant 0 : index
    %c0_0 = arith.constant 0 : index
    %0 = vector.load %arg1[%c0, %c0_0] : memref<128x9xf32, #tpu.memory_space<vmem>>, vector<128x9xf32>
    %c0_1 = arith.constant 0 : index
    %c0_2 = arith.constant 0 : index
    %1 = vector.load %arg2[%c0_1, %c0_2] : memref<9x64xf32, #tpu.memory_space<vmem>>, vector<9x64xf32>
    %cst = arith.constant dense<0.000000e+00> : vector<128x64xf32>
    %2 = tpu.matmul %0, %1, %cst {dimension_numbers = #tpu.dot_dimension_numbers<[1], [0], [0], [1], [0, 0, 1, 1], [], []>} : vector<128x9xf32>, vector<9x64xf32>, vector<128x64xf32> -> vector<128x64xf32>
    %c0_3 = arith.constant 0 : index
    %c0_4 = arith.constant 0 : index
    %3 = vector.load %arg3[%c0_3, %c0_4] : memref<1x64xf32, #tpu.memory_space<vmem>>, vector<1x64xf32>
    %4 = vector.broadcast %3 : vector<1x64xf32> to vector<128x64xf32>
    %5 = arith.addf %2, %4 : vector<128x64xf32>
    %6 = math.tanh %5 : vector<128x64xf32>
    %c0_5 = arith.constant 0 : index
    %c0_6 = arith.constant 0 : index
    %7 = vector.load %arg4[%c0_5, %c0_6] : memref<64x64xf32, #tpu.memory_space<vmem>>, vector<64x64xf32>
    %cst_7 = arith.constant dense<0.000000e+00> : vector<128x64xf32>
    %8 = tpu.matmul %6, %7, %cst_7 {dimension_numbers = #tpu.dot_dimension_numbers<[1], [0], [0], [1], [0, 0, 1, 1], [], []>} : vector<128x64xf32>, vector<64x64xf32>, vector<128x64xf32> -> vector<128x64xf32>
    %c0_8 = arith.constant 0 : index
    %c0_9 = arith.constant 0 : index
    %9 = vector.load %arg5[%c0_8, %c0_9] : memref<1x64xf32, #tpu.memory_space<vmem>>, vector<1x64xf32>
    %10 = vector.broadcast %9 : vector<1x64xf32> to vector<128x64xf32>
    %11 = arith.addf %8, %10 : vector<128x64xf32>
    %12 = math.tanh %11 : vector<128x64xf32>
    %c0_10 = arith.constant 0 : index
    %c0_11 = arith.constant 0 : index
    %13 = vector.load %arg6[%c0_10, %c0_11] : memref<8x64xf32, #tpu.memory_space<vmem>>, vector<8x64xf32>
    %cst_12 = arith.constant dense<0.000000e+00> : vector<8x128xf32>
    %14 = tpu.matmul %13, %12, %cst_12 {dimension_numbers = #tpu.dot_dimension_numbers<[1], [1], [0], [0], [0, 0, 1, 0], [], []>} : vector<8x64xf32>, vector<128x64xf32>, vector<8x128xf32> -> vector<8x128xf32>
    %c0_13 = arith.constant 0 : index
    %c0_14 = arith.constant 0 : index
    %15 = vector.load %arg7[%c0_13, %c0_14] : memref<8x1xf32, #tpu.memory_space<vmem>>, vector<8x1xf32>
    %16 = vector.broadcast %15 : vector<8x1xf32> to vector<8x128xf32>
    %17 = arith.addf %14, %16 : vector<8x128xf32>
    %c0_15 = arith.constant 0 : index
    %c0_16 = arith.constant 0 : index
    %18 = vector.load %arg8[%c0_15, %c0_16] : memref<8x128xf32, #tpu.memory_space<vmem>>, vector<8x128xf32>
    tpu.vector_store %arg8[%c0_15, %c0_16], %17 {strides = array<i32>} : memref<8x128xf32, #tpu.memory_space<vmem>>, vector<8x128xf32>,
    return
  }
  func.func @transform_0(%arg0: i32) -> (i32, i32) {
    %c0_i32 = arith.constant 0 : i32
    %c0_i32_0 = arith.constant 0 : i32
    return %arg0, %c0_i32 : i32, i32
  }
  func.func @transform_1(%arg0: i32) -> (i32, i32) {
    %c0_i32 = arith.constant 0 : i32
    %c0_i32_0 = arith.constant 0 : i32
    %c0_i32_1 = arith.constant 0 : i32
    return %c0_i32, %c0_i32_0 : i32, i32
  }
  func.func @transform_2(%arg0: i32) -> (i32, i32) {
    %c0_i32 = arith.constant 0 : i32
    %c0_i32_0 = arith.constant 0 : i32
    %c0_i32_1 = arith.constant 0 : i32
    return %c0_i32, %c0_i32_0 : i32, i32
  }
  func.func @transform_3(%arg0: i32) -> (i32, i32) {
    %c0_i32 = arith.constant 0 : i32
    %c0_i32_0 = arith.constant 0 : i32
    %c0_i32_1 = arith.constant 0 : i32
    return %c0_i32, %c0_i32_0 : i32, i32
  }
  func.func @transform_4(%arg0: i32) -> (i32, i32) {
    %c0_i32 = arith.constant 0 : i32
    %c0_i32_0 = arith.constant 0 : i32
    %c0_i32_1 = arith.constant 0 : i32
    return %c0_i32, %c0_i32_0 : i32, i32
  }
  func.func @transform_5(%arg0: i32) -> (i32, i32) {
    %c0_i32 = arith.constant 0 : i32
    %c0_i32_0 = arith.constant 0 : i32
    %c0_i32_1 = arith.constant 0 : i32
    return %c0_i32, %c0_i32_0 : i32, i32
  }
  func.func @transform_6(%arg0: i32) -> (i32, i32) {
    %c0_i32 = arith.constant 0 : i32
    %c0_i32_0 = arith.constant 0 : i32
    %c0_i32_1 = arith.constant 0 : i32
    return %c0_i32, %c0_i32_0 : i32, i32
  }
  func.func @transform_7(%arg0: i32) -> (i32, i32) {
    %c0_i32 = arith.constant 0 : i32
    %c0_i32_0 = arith.constant 0 : i32
    return %c0_i32, %arg0 : i32, i32
  }
}

</mosaic_0001>

<bundles_post_ra>
// kernel: tpu_custom_call.1
= control target key start
LH: loop header
LB: loop body
LE: loop exit
PB: predicated region body
PF: predicated region fallthrough
CT: control target
= control target key end

     0   :  { %vm101_vm0 = vcmask 1040384   ;;  %vm997_vm1 = vmmov 1   ;;  %vm52_vm3 = vcmask 72704   ;;  %s1244_s0 = inlined_call_operand.vmem [shape: f32[128,9], index: 0, kind: input, shape index: {}]   ;;  %s1245_s1 = inlined_call_operand.vmem [shape: f32[9,64], index: 1, kind: input, shape index: {}]   ;;  %s1246_s2 = inlined_call_operand.vmem [shape: f32[1,64], index: 2, kind: input, shape index: {}]   ;;  %s1247_s3 = inlined_call_operand.vmem [shape: f32[64,64], index: 3, kind: input, shape index: {}]   ;;  %s1248_s4 = inlined_call_operand.vmem [shape: f32[1,64], index: 4, kind: input, shape index: {}]   ;;  %s1249_s5 = inlined_call_operand.vmem [shape: f32[8,64], index: 5, kind: input, shape index: {}]   ;;  %s1250_s6 = inlined_call_operand.vmem [shape: f32[8,1], index: 6, kind: input, shape index: {}]   ;;  %s1251_s7 = inlined_call_operand.hbm [shape: f32[8,128], index: 7, kind: output, shape index: {}]  }
   0x1   :  { %v43_v0 = vld [vmem:[%s1245_s1] sm:$0xff]  ;;  %v44_v1 = vld [vmem:[%s1245_s1 + $0x8] sm:$0x1]  ;;  %vm849_vm2 = vmpackc.low %vm101_vm0, %vm997_vm1 }
   0x2   :  { %v27_v2 = vld [vmem:[%s1244_s0] sm:$0xff]  ;;  %v848_v3 = vpack.c.bf16 %v44_v1, %v43_v0  ;;  %v28_v4 = vld [vmem:[%s1244_s0 + $0x8] sm:$0xff]  ;;  %v29_v5 = vld [vmem:[%s1244_s0 + $0x10] sm:$0xff] }
   0x3   :  { %749 = vmatprep.mubr.msk.f32.mxu1 %vm52_vm3, %v27_v2  ;;  %v266_v6 = vld [vmem:[%s1247_s3] sm:$0xff]  ;;  %v267_v7 = vld [vmem:[%s1247_s3 + $0x8] sm:$0xff]  ;;  %v30_v8 = vld [vmem:[%s1244_s0 + $0x18] sm:$0xff] }
   0x4   :  { %850 = vmatprep.subr.msk.bf16.mxu1 %vm849_vm2, %v848_v3  ;;  %v854_v9 = vpack.c.bf16 %v267_v7, %v266_v6  ;;  %v268_v10 = vld [vmem:[%s1247_s3 + $0x10] sm:$0xff]  ;;  %v269_v11 = vld [vmem:[%s1247_s3 + $0x18] sm:$0xff]  ;;  %v270_v13 = vld [vmem:[%s1247_s3 + $0x20] sm:$0xff] }
   0x5   :  { %853 = vmatpush3.bf16.msk.msra.mxu1 %vm849_vm2, %v848_v3  ;;  %v858_v12 = vpack.c.bf16 %v269_v11, %v268_v10  ;;  %v271_v14 = vld [vmem:[%s1247_s3 + $0x28] sm:$0xff] }
   0x8   :  { %750 = vmatmul.mubr.msk.f32.vlgmr.msra.gmra.mrb[0].mxu1 %vm52_vm3, %v28_v4 }
   0x9   :  { %752 = vmatprep.mubr.msk.f32.mxu1 %vm52_vm3, %v29_v5 }
   0xa   :  { %12 = vsyncpa [#allocation3], 0  ;;  %v31_v15 = vld [vmem:[%s1244_s0 + $0x20] sm:$0xff]  ;;  %855 = vmatprep.subr.bf16.mxu1 %v854_v9  ;;  %v862_v16 = vpack.c.bf16 %v271_v14, %v270_v13  ;;  %v32_v17 = vld [vmem:[%s1244_s0 + $0x28] sm:$0xff]  ;;  %vm281_vm4 = vcmask 523264   ;;  %vm999_vm5 = vmmov 0  }
   0xb   :  { %857 = vmatpush3.bf16.msra.mxu1 %v854_v9  ;;  %v33_v18 = vld [vmem:[%s1244_s0 + $0x30] sm:$0xff]  ;;  %v34_v19 = vld [vmem:[%s1244_s0 + $0x38] sm:$0xff]  ;;  %v35_v20 = vld [vmem:[%s1244_s0 + $0x40] sm:$0xff]  ;;  %s1002_s8 = smov [#allocation2]  }
   0xc   :  { %753 = vmatmul.mubr.msk.f32.gmra.mrb[2].mxu1 %vm52_vm3, %v30_v8  ;;  %859 = vmatprep.subr.bf16.mxu1 %v858_v12  ;;  %v36_v21 = vld [vmem:[%s1244_s0 + $0x48] sm:$0xff]  ;;  %v37_v22 = vld [vmem:[%s1244_s0 + $0x50] sm:$0xff]  ;;  %v38_v23 = vld [vmem:[%s1244_s0 + $0x58] sm:$0xff]  ;;  %s626_s9 = sshll.u32 %s1002_s8, 4  ;;  %s627_s9 = int_to_ptr.vmem [resolvable:$true] %s626_s9 }
   0xd   :  { %755 = vmatprep.mubr.msk.f32.mxu1 %vm52_vm3, %v31_v15  ;;  %v39_v24 = vld [vmem:[%s1244_s0 + $0x60] sm:$0xff]  ;;  %v40_v25 = vld [vmem:[%s1244_s0 + $0x68] sm:$0xff]  ;;  %v41_v26 = vld [vmem:[%s1244_s0 + $0x70] sm:$0xff]  ;;  %s973_s10 = scalar_lea.vmem %s627_s9, 128  ;;  %p978_p1 = scmp.lt.s32.totalorder %s627_s9, %s627_s9 }
   0xe   :  { %v42_v27 = vld [vmem:[%s1244_s0 + $0x78] sm:$0xff]  ;;  %v272_v28 = vld [vmem:[%s1247_s3 + $0x30] sm:$0xff]  ;;  %v1140_v31 = vld [vmem:[%s1246_s2] ss:$0 sm:$0xff]  ;;  %p974_p0 = scmp.ne.s32.totalorder %s627_s9, %s973_s10  ;;  %p979_p2 = scmp.lt.s32.totalorder %s973_s10, %s973_s10 }
   0xf   :  { %861 = vmatpush3.bf16.msra.mxu1 %v858_v12  ;;  %v273_v29 = vld [vmem:[%s1247_s3 + $0x38] sm:$0xff]  ;;  %vm1192_vm6 = vmpackc.low %vm281_vm4, %vm281_vm4 }
  0x10   :  { %756 = vmatmul.mubr.msk.f32.gmra.mrb[4].mxu1 %vm52_vm3, %v32_v17  ;;  %863 = vmatprep.subr.bf16.mxu1 %v862_v16  ;;  %v866_v30 = vpack.c.bf16 %v273_v29, %v272_v28  ;;  %v1000_v17 = vmov 0.0   ;;  %p980_p3 = por %p979_p2, %p978_p1 }
  0x11   :  { %758 = vmatprep.mubr.msk.f32.mxu1 %vm52_vm3, %v33_v18  ;;  %845 = vmatprep.mubr.msk.f32.mxu0 %vm999_vm5, %v1000_v17  ;;  %v492_v18 = vld [vmem:[%s1250_s6] sm:$0xff] }
  0x12   :  { %p981_p4 = pnand %p980_p3, %p974_p0 }
  0x13   :  { %865 = vmatpush3.bf16.msra.mxu1 %v862_v16  ;;  %v998_v16 = vmov 0.0|0.0  }
  0x14   :  { %759 = vmatmul.mubr.msk.f32.gmra.mrb[6].mxu1 %vm52_vm3, %v34_v19  ;;  %867 = vmatprep.subr.bf16.mxu1 %v866_v30  ;;  %v1001_v19 = vmov 0  }
  0x15   :  { %761 = vmatprep.mubr.msk.f32.mxu1 %vm52_vm3, %v35_v20  ;;  %870 = vmatprep.subr.bf16.mxu0 %v998_v16  ;;  %v1181_v20 = vld [vmem:[%s1248_s4] ss:$0 sm:$0xff] }
  0x16   :  { %908 = vset.pattern.permute.xlu0 %v1001_v19 }
  0x17   :  { %869 = vmatpush3.bf16.msra.mxu1 %v866_v30  ;;  %495 = vperm.xlu0 %908, %v492_v18  }
  0x18   :  { %762 = vmatmul.mubr.msk.f32.gmra.mrb[8].mxu1 %vm52_vm3, %v36_v21 }
  0x19   :  { %764 = vmatprep.mubr.msk.f32.mxu1 %vm52_vm3, %v37_v22 }
  0x1c   :  { %765 = vmatmul.mubr.msk.f32.gmra.mrb[10].mxu1 %vm52_vm3, %v38_v23 }
  0x1d   :  { %767 = vmatprep.mubr.msk.f32.mxu1 %vm52_vm3, %v39_v24 }
  0x20   :  { %768 = vmatmul.mubr.msk.f32.gmra.mrb[12].mxu1 %vm52_vm3, %v40_v25 }
  0x21   :  { %770 = vmatprep.mubr.msk.f32.mxu1 %vm52_vm3, %v41_v26 }
  0x24   :  { %771 = vmatmul.mubr.msk.f32.gmra.mrb[14].mxu1 %vm52_vm3, %v42_v27 }
  0xdb   :  { %v751_v32 = vpop.f32.mrb[0].mxu1 }
  0xdc   :  { %v177_v33 = vadd.f32 %v751_v32, %v1140_v31  ;;  %v171_v34 = vpop.f32.mrb[1].mxu1 }
  0xdd   :  { %v172_v35 = vadd.f32 %v1140_v31, %v171_v34 }
  0xdf   :  { %909 = vtanh.f32 %v172_v35  ;;  %v754_v36 = vpop.f32.mrb[2].mxu1 }
  0xe0   :  { %911 = vtanh.f32 %v177_v33  ;;  %v187_v37 = vadd.f32 %v754_v36, %v1140_v31  ;;  %v181_v38 = vpop.f32.mrb[3].mxu1 }
  0xe1   :  { %v182_v39 = vadd.f32 %v1140_v31, %v181_v38 }
  0xe2   :  { %913 = vtanh.f32 %v187_v37 }
  0xe3   :  { %915 = vtanh.f32 %v182_v39  ;;  %v757_v40 = vpop.f32.mrb[4].mxu1 }
  0xe4   :  { %v197_v41 = vadd.f32 %v757_v40, %v1140_v31  ;;  %v191_v42 = vpop.f32.mrb[5].mxu1 }
  0xe5   :  { %v192_v43 = vadd.f32 %v1140_v31, %v191_v42 }
  0xe6   :  { %917 = vtanh.f32 %v197_v41 }
  0xe7   :  { %919 = vtanh.f32 %v192_v43  ;;  %v760_v44 = vpop.f32.mrb[6].mxu1 }
  0xe8   :  { %v207_v45 = vadd.f32 %v760_v44, %v1140_v31  ;;  %v201_v46 = vpop.f32.mrb[7].mxu1 }
  0xe9   :  { %v910_v47 = vpop.eup %909  ;;  %v202_v48 = vadd.f32 %v1140_v31, %v201_v46 }
  0xea   :  { %v912_v49 = vpop.eup %911  ;;  %789 = vmatprep.mubr.msk.f32.mxu1 %vm281_vm4, %v910_v47  ;;  %921 = vtanh.f32 %v207_v45 }
  0xeb   :  { %790 = vmatmul.mubr.msk.f32.vlgmr.msra.gmra.mrb[16].mxu1 %vm281_vm4, %v912_v49  ;;  %923 = vtanh.f32 %v202_v48  ;;  %v763_v50 = vpop.f32.mrb[8].mxu1 }
  0xec   :  { %v914_v51 = vpop.eup %913  ;;  %v217_v52 = vadd.f32 %v763_v50, %v1140_v31  ;;  %v211_v53 = vpop.f32.mrb[9].mxu1 }
  0xed   :  { %v916_v54 = vpop.eup %915  ;;  %v212_v55 = vadd.f32 %v1140_v31, %v211_v53 }
  0xee   :  { %792 = vmatprep.mubr.msk.f32.mxu1 %vm281_vm4, %v916_v54  ;;  %925 = vtanh.f32 %v217_v52 }
  0xef   :  { %793 = vmatmul.mubr.msk.f32.gmra.mrb[18].mxu1 %vm281_vm4, %v914_v51  ;;  %927 = vtanh.f32 %v212_v55  ;;  %v766_v56 = vpop.f32.mrb[10].mxu1 }
  0xf0   :  { %v918_v57 = vpop.eup %917  ;;  %v227_v58 = vadd.f32 %v766_v56, %v1140_v31  ;;  %v221_v59 = vpop.f32.mrb[11].mxu1 }
  0xf1   :  { %v920_v60 = vpop.eup %919  ;;  %v222_v61 = vadd.f32 %v1140_v31, %v221_v59 }
  0xf2   :  { %795 = vmatprep.mubr.msk.f32.mxu1 %vm281_vm4, %v920_v60  ;;  %929 = vtanh.f32 %v227_v58 }
  0xf3   :  { %796 = vmatmul.mubr.msk.f32.gmra.mrb[20].mxu1 %vm281_vm4, %v918_v57  ;;  %931 = vtanh.f32 %v222_v61  ;;  %v769_v62 = vpop.f32.mrb[12].mxu1 }
  0xf4   :  { %v922_v63 = vpop.eup %921  ;;  %v237_v0 = vadd.f32 %v769_v62, %v1140_v31  ;;  %v231_v1 = vpop.f32.mrb[13].mxu1 }
  0xf5   :  { %v924_v2 = vpop.eup %923  ;;  %v232_v3 = vadd.f32 %v1140_v31, %v231_v1 }
  0xf6   :  { %798 = vmatprep.mubr.msk.f32.mxu1 %vm281_vm4, %v924_v2  ;;  %933 = vtanh.f32 %v237_v0 }
  0xf7   :  { %799 = vmatmul.mubr.msk.f32.gmra.mrb[22].mxu1 %vm281_vm4, %v922_v63  ;;  %935 = vtanh.f32 %v232_v3  ;;  %v772_v4 = vpop.f32.mrb[14].mxu1 }
  0xf8   :  { %v926_v5 = vpop.eup %925  ;;  %v247_v6 = vadd.f32 %v772_v4, %v1140_v31  ;;  %v241_v7 = vpop.f32.mrb[15].mxu1 }
  0xf9   :  { %v928_v8 = vpop.eup %927  ;;  %v242_v9 = vadd.f32 %v1140_v31, %v241_v7 }
  0xfa   :  { %801 = vmatprep.mubr.msk.f32.mxu1 %vm281_vm4, %v928_v8  ;;  %937 = vtanh.f32 %v247_v6 }
  0xfb   :  { %802 = vmatmul.mubr.msk.f32.gmra.mrb[24].mxu1 %vm281_vm4, %v926_v5  ;;  %939 = vtanh.f32 %v242_v9 }
  0xfc   :  { %v930_v10 = vpop.eup %929 }
  0xfd   :  { %v932_v11 = vpop.eup %931 }
  0xfe   :  { %804 = vmatprep.mubr.msk.f32.mxu1 %vm281_vm4, %v932_v11 }
  0xff   :  { %805 = vmatmul.mubr.msk.f32.gmra.mrb[26].mxu1 %vm281_vm4, %v930_v10 }
 0x100   :  { %v934_v12 = vpop.eup %933 }
 0x101   :  { %v936_v13 = vpop.eup %935 }
 0x102   :  { %807 = vmatprep.mubr.msk.f32.mxu1 %vm281_vm4, %v936_v13 }
 0x103   :  { %808 = vmatmul.mubr.msk.f32.gmra.mrb[28].mxu1 %vm281_vm4, %v934_v12 }
 0x104   :  { %v938_v14 = vpop.eup %937 }
 0x105   :  { %v940_v15 = vpop.eup %939 }
 0x106   :  { %810 = vmatprep.mubr.msk.f32.mxu1 %vm281_vm4, %v940_v15  ;;  %v496_v15 = vpop.permute.xlu0 %495 }
 0x107   :  { %811 = vmatmul.mubr.msk.f32.gmra.mrb[30].mxu1 %vm281_vm4, %v938_v14  ;;  %v491_v14 = vld [vmem:[%s1249_s5] sm:$0xff] }
 0x1be   :  { %v791_v21 = vpop.f32.mrb[16].mxu1 }
 0x1bf   :  { %v402_v22 = vadd.f32 %v791_v21, %v1181_v20  ;;  %v396_v23 = vpop.f32.mrb[17].mxu1 }
 0x1c0   :  { %v397_v24 = vadd.f32 %v1181_v20, %v396_v23 }
 0x1c1   :  { %941 = vtanh.f32 %v402_v22 }
 0x1c2   :  { %943 = vtanh.f32 %v397_v24  ;;  %v794_v25 = vpop.f32.mrb[18].mxu1 }
 0x1c3   :  { %v412_v26 = vadd.f32 %v794_v25, %v1181_v20  ;;  %v406_v27 = vpop.f32.mrb[19].mxu1 }
 0x1c4   :  { %v407_v28 = vadd.f32 %v1181_v20, %v406_v27 }
 0x1c5   :  { %945 = vtanh.f32 %v412_v26 }
 0x1c6   :  { %947 = vtanh.f32 %v407_v28  ;;  %v797_v29 = vpop.f32.mrb[20].mxu1 }
 0x1c7   :  { %v422_v30 = vadd.f32 %v797_v29, %v1181_v20  ;;  %v416_v31 = vpop.f32.mrb[21].mxu1 }
 0x1c8   :  { %v417_v32 = vadd.f32 %v1181_v20, %v416_v31 }
 0x1c9   :  { %949 = vtanh.f32 %v422_v30 }
 0x1ca   :  { %951 = vtanh.f32 %v417_v32  ;;  %v800_v33 = vpop.f32.mrb[22].mxu1 }
 0x1cb   :  { %v942_v34 = vpop.eup %941  ;;  %v432_v35 = vadd.f32 %v800_v33, %v1181_v20  ;;  %v426_v36 = vpop.f32.mrb[23].mxu1 }
 0x1cc   :  { %v944_v37 = vpop.eup %943  ;;  %v427_v39 = vadd.f32 %v1181_v20, %v426_v36 }
 0x1cd   :  { %v871_v40 = vpack.c.bf16 %v942_v34, %v944_v37  ;;  %953 = vtanh.f32 %v432_v35 }
 0x1ce   :  { %955 = vtanh.f32 %v427_v39  ;;  %v803_v41 = vpop.f32.mrb[24].mxu1 }
 0x1cf   :  { %v946_v42 = vpop.eup %945  ;;  %873 = vmatpush3.bf16.xpose.msk.msra.mxu0 %vm1192_vm6, %v871_v40  ;;  %v442_v43 = vadd.f32 %v803_v41, %v1181_v20  ;;  %v436_v44 = vpop.f32.mrb[25].mxu1 }
 0x1d0   :  { %v948_v45 = vpop.eup %947  ;;  %874 = vmatprep.subr.bf16.mxu0 %v998_v16  ;;  %v437_v46 = vadd.f32 %v1181_v20, %v436_v44 }
 0x1d1   :  { %v875_v47 = vpack.c.bf16 %v946_v42, %v948_v45  ;;  %957 = vtanh.f32 %v442_v43 }
 0x1d2   :  { %959 = vtanh.f32 %v437_v46  ;;  %v806_v48 = vpop.f32.mrb[26].mxu1 }
 0x1d3   :  { %v950_v49 = vpop.eup %949  ;;  %v452_v50 = vadd.f32 %v806_v48, %v1181_v20  ;;  %v446_v51 = vpop.f32.mrb[27].mxu1 }
 0x1d4   :  { %v952_v52 = vpop.eup %951  ;;  %v447_v53 = vadd.f32 %v1181_v20, %v446_v51 }
 0x1d5   :  { %v879_v54 = vpack.c.bf16 %v950_v49, %v952_v52  ;;  %961 = vtanh.f32 %v452_v50 }
 0x1d6   :  { %963 = vtanh.f32 %v447_v53  ;;  %v809_v55 = vpop.f32.mrb[28].mxu1 }
 0x1d7   :  { %v954_v56 = vpop.eup %953  ;;  %877 = vmatpush3.bf16.xpose.msk.msra.mxu0 %vm1192_vm6, %v875_v47  ;;  %v462_v57 = vadd.f32 %v809_v55, %v1181_v20  ;;  %v456_v58 = vpop.f32.mrb[29].mxu1 }
 0x1d8   :  { %v956_v59 = vpop.eup %955  ;;  %878 = vmatprep.subr.bf16.mxu0 %v998_v16  ;;  %v457_v60 = vadd.f32 %v1181_v20, %v456_v58 }
 0x1d9   :  { %v883_v61 = vpack.c.bf16 %v954_v56, %v956_v59  ;;  %965 = vtanh.f32 %v462_v57 }
 0x1da   :  { %967 = vtanh.f32 %v457_v60  ;;  %v812_v62 = vpop.f32.mrb[30].mxu1 }
 0x1db   :  { %v958_v63 = vpop.eup %957  ;;  %v472_v0 = vadd.f32 %v812_v62, %v1181_v20  ;;  %v466_v1 = vpop.f32.mrb[31].mxu1 }
 0x1dc   :  { %v960_v2 = vpop.eup %959  ;;  %v467_v3 = vadd.f32 %v1181_v20, %v466_v1 }
 0x1dd   :  { %v887_v4 = vpack.c.bf16 %v958_v63, %v960_v2  ;;  %969 = vtanh.f32 %v472_v0 }
 0x1de   :  { %971 = vtanh.f32 %v467_v3 }
 0x1df   :  { %v962_v5 = vpop.eup %961  ;;  %881 = vmatpush3.bf16.xpose.msk.msra.mxu0 %vm1192_vm6, %v879_v54 }
 0x1e0   :  { %v964_v6 = vpop.eup %963  ;;  %882 = vmatprep.subr.bf16.mxu0 %v998_v16 }
 0x1e1   :  { %v891_v7 = vpack.c.bf16 %v962_v5, %v964_v6 }
 0x1e3   :  { %v966_v8 = vpop.eup %965 }
 0x1e4   :  { %v968_v9 = vpop.eup %967 }
 0x1e5   :  { %v895_v10 = vpack.c.bf16 %v966_v8, %v968_v9 }
 0x1e7   :  { %v970_v11 = vpop.eup %969  ;;  %885 = vmatpush3.bf16.xpose.msk.msra.mxu0 %vm1192_vm6, %v883_v61 }
 0x1e8   :  { %v972_v12 = vpop.eup %971  ;;  %886 = vmatprep.subr.bf16.mxu0 %v998_v16 }
 0x1e9   :  { %v899_v13 = vpack.c.bf16 %v970_v11, %v972_v12 }
 0x1ef   :  { %889 = vmatpush3.bf16.xpose.msk.msra.mxu0 %vm1192_vm6, %v887_v4 }
 0x1f0   :  { %890 = vmatprep.subr.bf16.mxu0 %v998_v16 }
 0x1f7   :  { %893 = vmatpush3.bf16.xpose.msk.msra.mxu0 %vm1192_vm6, %v891_v7 }
 0x1f8   :  { %894 = vmatprep.subr.bf16.mxu0 %v998_v16 }
 0x1ff   :  { %897 = vmatpush3.bf16.xpose.msk.msra.mxu0 %vm1192_vm6, %v895_v10 }
 0x200   :  { %898 = vmatprep.subr.bf16.mxu0 %v998_v16 }
 0x207   :  { %901 = vmatpush3.bf16.xpose.msk.msra.mxu0 %vm1192_vm6, %v899_v13 }
 0x20e   :  { %846 = vmatmul.mubr.msk.f32.vlgmr.msra.gmra.mrb[0].mxu0 %vm281_vm4, %v491_v14 }
 0x2e1   :  { %v615_v17 = vpop.f32.mrb[0].mxu0 }
 0x2e2   :  { %v616_v18 = vadd.f32 %v615_v17, %v496_v15  ;;  %v847_v19 = vpop.f32.mrb[1].mxu0 }
 0x2e4   :  { %619 = vst [vmem:[#allocation2] sm:$0xff] %v616_v18 }
 0x2e5   :  { %984 = shalt.err (!%p981_p4)
}
 0x2e6   :  { %s985_s5 = scalar_lea.hbm %s1251_s7, 128 }
 0x2e7   :  { %p986_p5 = scmp.ne.s32.totalorder %s1251_s7, %s985_s5  ;;  %p989_p6 = scmp.lt.u32.totalorder %s985_s5, %s1251_s7 }
 0x2e9   :  { %p991_p7 = pnand %p989_p6, %p986_p5 }
 0x2eb   :  { %994 = shalt.err (!%p991_p7)
}
 0x2ec   :  { %629 = dma.vmem_to_hbm [thread:$0]  %s627_s9, 128, %s1251_s7, [#allocation3]  }
 0x2ed   :  { %995 = dma.done.wait [#allocation3], 128  }
 0x2ee   :  { %996 = vsyncadd [#allocation3], 4294967168 }
 0x2ef   :  { %633 = vsyncpa [#allocation3], 1 }

</bundles_post_ra>
